<compile_context>
chip_gen: v6e
topology: v6e:2x2x1
jax: 0.10.0
libtpu: 0.0.40
codegen_flags: <defaults>
</compile_context>

<pallas_src>
import functools

import jax
import jax.numpy as jnp
import numpy as np
from jax.experimental import pallas as pl
from jax.experimental.pallas import tpu as pltpu


# -----------------------------------------------------------------------------
# Small helpers
# -----------------------------------------------------------------------------
def _cdiv(a, b):
    return -(-a // b)


def _round_up(a, b):
    return _cdiv(a, b) * b


def _round_down(a, b):
    return (a // b) * b


@functools.lru_cache(maxsize=1)
def _f32_block_budget_bytes():
    """Per-block f32-output budget, sized per TPU generation.

    Double-buffered totals (f32 out + int8 in + tiny sidecar) stay under every
    generation's scoped-VMEM default: v5e 16 MiB, v6e 32 MiB, v7x 32 MiB.
    """
    try:
        kind = jax.devices()[0].device_kind.lower()
    except Exception:  # pragma: no cover - CPU fallback / interpret mode
        kind = ""
    if "v6" in kind:
        return 4 * 1024 * 1024
    if "v7" in kind or "tpu7" in kind or "7x" in kind:
        return 6 * 1024 * 1024
    # v5e / v5p / v4 / unknown: conservative (16 MiB scoped-VMEM default on v5e).
    return 2 * 1024 * 1024


def _row_granularity(*dtypes):
    """Sublane (2nd-to-last dim) granularity so packed dtypes stay tile-aligned."""
    g = 8
    for dt in dtypes:
        g = max(g, 32 // max(1, np.dtype(dt).itemsize))
    return g


def _pick_tiles(rows, cols, row_gran, budget_bytes, sidecar_lanes=0):
    """Pick (row_tile, lane_tile) for an f32-output block of ~budget_bytes.

    Lane tile: multiple of 128 (or the full dim), as wide as the budget allows,
    evened out across lane grid steps.  Row tile: multiple of `row_gran` (or the
    full dim) filling the remaining budget; `sidecar_lanes` accounts for the
    lane-padded per-row scale/bias sidecar living alongside the block in VMEM.
    """
    budget_elems = max(budget_bytes // 4, row_gran * 128)

    # ---- lane (last-dim) tile ----
    if cols <= 128:
        tl = cols  # block equals the full array dim (allowed by Mosaic)
    else:
        cols128 = _round_down(cols, 128)
        max_tl = max(128, _round_down(budget_elems // row_gran, 128))
        if cols128 <= max_tl:
            tl = cols128
        else:
            nsteps = _cdiv(cols128, max_tl)
            tl = _round_up(_cdiv(cols128, nsteps), 128)

    # ---- row (2nd-to-last dim) tile ----
    max_tr = max(row_gran, _round_down(budget_elems // (tl + sidecar_lanes), row_gran))
    if rows <= max_tr:
        tr = rows
    else:
        nsteps = _cdiv(rows, max_tr)
        tr = min(max_tr, _round_up(_cdiv(rows, nsteps), row_gran))

    # ---- keep >=2 grid steps on big tensors so both TCs of a v7x/megacore chip
    #      get work (a 1-step 'parallel' grid leaves one core idle) ----
    if rows * cols >= (1 << 16) and _cdiv(rows, tr) * _cdiv(cols, tl) == 1:
        if rows > row_gran:
            tr = _round_up(_cdiv(rows, 2), row_gran)
        elif cols > 256:
            tl = max(128, _round_up(_cdiv(cols, 2), 128))
    return tr, tl


def _flatten_2d(x):
    """Metadata-only reshape of a contiguous array to 2-D (no pad, no HBM copy)."""
    total = int(np.prod(x.shape, dtype=np.int64)) if x.ndim else 1
    # Prefer a lane-dense width: a multiple of 128 that divides total exactly.
    for k in (4096, 2048, 1024, 512, 256, 128):
        if total >= k and total % k == 0:
            return x.reshape(total // k, k)
    # Ragged fallback: natural trailing-dim layout; Pallas clips the edge blocks.
    if x.ndim >= 2:
        lead = int(np.prod(x.shape[:-1], dtype=np.int64))
        return x.reshape(lead, x.shape[-1])
    return x.reshape(1, total)


# -----------------------------------------------------------------------------
# Pallas kernels
# -----------------------------------------------------------------------------
def _dequant_rows_kernel(x_ref, sb_ref, o_ref):
    # x_ref/o_ref: (tr, tl); sb_ref: (tr, 2) -> col 0 = scale, col 1 = bias.
    sb = sb_ref[...]
    s = sb[:, 0:1]
    b = sb[:, 1:2]
    o_ref[...] = x_ref[...].astype(jnp.float32) * s + b


def _dequant_lanes_kernel(x_ref, sb_ref, o_ref):
    # x_ref/o_ref: (tr, tl); sb_ref: (2, tl) -> row 0 = scale, row 1 = bias.
    sb = sb_ref[...]
    s = sb[0:1, :]
    b = sb[1:2, :]
    o_ref[...] = x_ref[...].astype(jnp.float32) * s + b


def _dequant_pertensor_kernel(x_ref, sb_ref, o_ref):
    # x_ref/o_ref: (tr, tl); sb_ref: (2,) f32 in SMEM -> (scale, bias) scalars.
    s = sb_ref[0]
    b = sb_ref[1]
    o_ref[...] = x_ref[...].astype(jnp.float32) * s + b


def _relu_kernel(x_ref, o_ref):
    o_ref[...] = jnp.maximum(x_ref[...], 0)


# -----------------------------------------------------------------------------
# Wrappers
# -----------------------------------------------------------------------------
def _dequantize_per_tensor(x, scales, bias):
    orig_shape = x.shape
    x2 = _flatten_2d(x)
    rows, cols = x2.shape
    gran = _row_granularity(x.dtype, jnp.float32)
    tr, tl = _pick_tiles(rows, cols, gran, _f32_block_budget_bytes())
    grid = (_cdiv(rows, tr), _cdiv(cols, tl))
    sb = jnp.concatenate([scales.reshape(1), bias.reshape(1)]).astype(jnp.float32)

    out2 = pl.pallas_call(
        _dequant_pertensor_kernel,
        out_shape=jax.ShapeDtypeStruct((rows, cols), jnp.float32),
        grid=grid,
        in_specs=[
            pl.BlockSpec((tr, tl), lambda r, l: (r, l)),
            pl.BlockSpec(memory_space=pltpu.MemorySpace.SMEM),  # (scale, bias)
        ],
        out_specs=pl.BlockSpec((tr, tl), lambda r, l: (r, l)),
        compiler_params=pltpu.CompilerParams(
            dimension_semantics=("parallel", "parallel")
        ),
    )(x2, sb)
    return out2.reshape(orig_shape)


@functools.partial(jax.jit, static_argnames=("axis",))
def dequantize_along_axis(x, scales, zeros, axis=1):
    """(x - zeros) * scales with per-channel broadcast along `axis` (or per-tensor)."""
    scales = jnp.asarray(scales, jnp.float32)
    zeros = jnp.asarray(zeros, jnp.float32)
    if scales.ndim == 0:
        scales = scales.reshape(1)
        zeros = zeros.reshape(1)
    # Fold (x - z) * s -> x * s + b with b = -z*s (single FMA in-kernel).
    bias = -zeros * scales

    if scales.shape[0] == 1:
        return _dequantize_per_tensor(x, scales, bias)

    orig_shape = x.shape
    axis = axis % x.ndim
    c = orig_shape[axis]
    assert scales.shape[0] == c, "scales length must match x.shape[axis]"

    pre = int(np.prod(orig_shape[:axis], dtype=np.int64))
    post = int(np.prod(orig_shape[axis + 1 :], dtype=np.int64))

    budget = _f32_block_budget_bytes()
    gran = _row_granularity(x.dtype, jnp.float32)

    if post >= 128:
        # Scale constant along lanes, varies along rows.  Fold `pre` into the row
        # axis (metadata-only reshape); tile the tiny (c,2) scale/bias sidecar by
        # `pre` so every grid step needs exactly one small side DMA.
        rows, cols = pre * c, post
        x2 = x.reshape(rows, cols)
        sb = jnp.stack([scales, bias], axis=1)  # (c, 2)
        if pre > 1:
            sb = jnp.tile(sb, (pre, 1))  # (pre*c, 2) -- a few KiB at most
        # sidecar_lanes=128: the (tr,2) f32 sidecar pads to 128 lanes in VMEM.
        tr, tl = _pick_tiles(rows, cols, gran, budget, sidecar_lanes=128)
        grid = (_cdiv(rows, tr), _cdiv(cols, tl))
        out2 = pl.pallas_call(
            _dequant_rows_kernel,
            out_shape=jax.ShapeDtypeStruct((rows, cols), jnp.float32),
            grid=grid,
            in_specs=[
                pl.BlockSpec((tr, tl), lambda r, l: (r, l)),
                pl.BlockSpec((tr, 2), lambda r, l: (r, 0)),
            ],
            out_specs=pl.BlockSpec((tr, tl), lambda r, l: (r, l)),
            compiler_params=pltpu.CompilerParams(
                dimension_semantics=("parallel", "parallel")
            ),
        )(x2, sb)
    else:
        # post < 128: a (.., post) last dim would force masked narrow stores.
        # Pre-broadcast scale/bias along `post` (tiny) and run the lane-dense
        # (pre, c*post) layout with >=128-lane tiles; scale varies along lanes.
        rows, cols = pre, c * post
        x2 = x.reshape(rows, cols)
        sv = jnp.repeat(scales, post)  # (c*post,)
        bv = jnp.repeat(bias, post)
        sb = jnp.stack([sv, bv], axis=0)  # (2, c*post)
        tr, tl = _pick_tiles(rows, cols, gran, budget)
        grid = (_cdiv(rows, tr), _cdiv(cols, tl))
        out2 = pl.pallas_call(
            _dequant_lanes_kernel,
            out_shape=jax.ShapeDtypeStruct((rows, cols), jnp.float32),
            grid=grid,
            in_specs=[
                pl.BlockSpec((tr, tl), lambda r, l: (r, l)),
                pl.BlockSpec((2, tl), lambda r, l: (0, l)),
            ],
            out_specs=pl.BlockSpec((tr, tl), lambda r, l: (r, l)),
            compiler_params=pltpu.CompilerParams(
                dimension_semantics=("parallel", "parallel")
            ),
        )(x2, sb)

    return out2.reshape(orig_shape)


@jax.jit
def relu_pallas(x):
    orig_shape = x.shape
    x2 = _flatten_2d(x)  # metadata-only: no pad / slice HBM copies
    rows, cols = x2.shape
    gran = _row_granularity(x.dtype)
    tr, tl = _pick_tiles(rows, cols, gran, _f32_block_budget_bytes())
    grid = (_cdiv(rows, tr), _cdiv(cols, tl))

    out2 = pl.pallas_call(
        _relu_kernel,
        out_shape=jax.ShapeDtypeStruct((rows, cols), x.dtype),
        grid=grid,
        in_specs=[pl.BlockSpec((tr, tl), lambda r, l: (r, l))],
        out_specs=pl.BlockSpec((tr, tl), lambda r, l: (r, l)),
        compiler_params=pltpu.CompilerParams(
            dimension_semantics=("parallel", "parallel")
        ),
    )(x2)
    return out2.reshape(orig_shape)


# -----------------------------------------------------------------------------
# Module mirror
# -----------------------------------------------------------------------------
class DequantizeLinear:
    """JAX/Pallas mirror of onnx2torch DequantizeLinear (inference forward)."""

    # TODO(synk): requires_grad_() / autograd bookkeeping of the torch module has
    # no Pallas equivalent; this mirror is inference-only.

    def __init__(self, scales, zeros, axis=1, tensor=None, is_relu_out=False):
        scales = jnp.asarray(scales)
        zeros = jnp.asarray(zeros)
        if scales.ndim == 0:
            scales = scales.reshape(1)
            zeros = zeros.reshape(1)
        self.scales = scales
        self.zeros = zeros
        self.axis = axis
        self.is_relu_out = is_relu_out
        self.tensor = None
        if tensor is not None:
            self.tensor = dequantize_along_axis(tensor, scales, zeros, axis)

    def __call__(self, input_tensor=None):
        if self.tensor is not None:
            return self.tensor
        if self.is_relu_out:
            return relu_pallas(input_tensor)
        return input_tensor


# -----------------------------------------------------------------------------
# Demo / check
# -----------------------------------------------------------------------------
if __name__ == "__main__":
    key = jax.random.PRNGKey(0)
    k1, k2, k3, k4, k5 = jax.random.split(key, 5)

    B, C, H, W = 2, 4, 16, 16
    x_q = jax.random.randint(k1, (B, C, H, W), -128, 128, dtype=jnp.int32).astype(
        jnp.int8
    )
    scales = jax.random.uniform(k2, (C,), jnp.float32) * 0.05 + 0.01
    zeros = jax.random.randint(k3, (C,), -10, 10, dtype=jnp.int32).astype(jnp.float32)

    # --- per-channel dequantize, post >= 128 (rows-scale path) ----------------
    mod = DequantizeLinear(scales, zeros, axis=1, tensor=x_q)
    out = jax.block_until_ready(mod())
    ref = (x_q.astype(jnp.float32) - zeros.reshape(1, C, 1, 1)) * scales.reshape(
        1, C, 1, 1
    )
    np.testing.assert_allclose(np.asarray(out), np.asarray(ref), rtol=1e-5, atol=1e-5)

    # --- per-channel dequantize, small spatial (post < 128 lane-dense path) ---
    x_q2 = jax.random.randint(k5, (B, C, 7, 7), -128, 128, dtype=jnp.int32).astype(
        jnp.int8
    )
    mod_small = DequantizeLinear(scales, zeros, axis=1, tensor=x_q2)
    out_small = jax.block_until_ready(mod_small())
    ref_small = (x_q2.astype(jnp.float32) - zeros.reshape(1, C, 1, 1)) * scales.reshape(
        1, C, 1, 1
    )
    np.testing.assert_allclose(
        np.asarray(out_small), np.asarray(ref_small), rtol=1e-5, atol=1e-5
    )

    # --- per-tensor (scalar scale) path ----------------------------------------
    s0 = jnp.asarray(0.0321, jnp.float32)
    z0 = jnp.asarray(3.0, jnp.float32)
    mod_pt = DequantizeLinear(s0, z0, axis=1, tensor=x_q)
    out_pt = jax.block_until_ready(mod_pt())
    ref_pt = (x_q.astype(jnp.float32) - z0) * s0
    np.testing.assert_allclose(
        np.asarray(out_pt), np.asarray(ref_pt), rtol=1e-5, atol=1e-5
    )

    # --- is_relu_out path (ragged, non-multiple-of-128 total: no-pad path) -----
    act = jax.random.normal(k4, (3, 5, 7), jnp.float32)
    mod_relu = DequantizeLinear(scales, zeros, axis=1, tensor=None, is_relu_out=True)
    out_relu = jax.block_until_ready(mod_relu(act))
    np.testing.assert_allclose(
        np.asarray(out_relu), np.maximum(np.asarray(act), 0.0), rtol=0, atol=0
    )

    # --- is_relu_out path, lane-dense size ---------------------------------------
    act2 = jax.random.normal(k4, (B, C, H, W), jnp.float32)
    out_relu2 = jax.block_until_ready(mod_relu(act2))
    np.testing.assert_allclose(
        np.asarray(out_relu2), np.maximum(np.asarray(act2), 0.0), rtol=0, atol=0
    )

    # --- identity path ----------------------------------------------------------
    mod_id = DequantizeLinear(scales, zeros, axis=1, tensor=None, is_relu_out=False)
    out_id = jax.block_until_ready(mod_id(act2))
    np.testing.assert_allclose(np.asarray(out_id), np.asarray(act2), rtol=0, atol=0)

    print("KERNEL_OK")
</pallas_src>

<mosaic_0001>
module attributes {stable_mosaic.version = 11 : i64} {
  func.func @_dequant_rows_kernel(%arg0: i32, %arg1: i32, %arg2: memref<8x256xi8, #tpu.memory_space<vmem>>, %arg3: memref<8x2xf32, #tpu.memory_space<vmem>>, %arg4: memref<8x256xf32, #tpu.memory_space<vmem>>) attributes {dimension_semantics = [#tpu.dimension_semantics<parallel>, #tpu.dimension_semantics<parallel>], iteration_bounds = array<i64: 1, 1>, scalar_prefetch = 0 : i64, scratch_operands = 0 : i64, tpu.core_type = #tpu.core_type<tc>, window_params = [{transform_indices = @transform_0, window_bounds = array<i64: 8, 256>}, {transform_indices = @transform_1, window_bounds = array<i64: 8, 2>}, {transform_indices = @transform_2, window_bounds = array<i64: 8, 256>}]} {
    %c0 = arith.constant 0 : index
    %c0_0 = arith.constant 0 : index
    %0 = vector.load %arg3[%c0, %c0_0] : memref<8x2xf32, #tpu.memory_space<vmem>>, vector<8x2xf32>
    %1 = vector.extract_strided_slice %0 {offsets = [0, 0], sizes = [8, 1], strides = [1, 1]} : vector<8x2xf32> to vector<8x1xf32>
    %2 = vector.extract_strided_slice %0 {offsets = [0, 1], sizes = [8, 1], strides = [1, 1]} : vector<8x2xf32> to vector<8x1xf32>
    %c0_1 = arith.constant 0 : index
    %c0_2 = arith.constant 0 : index
    %3 = vector.load %arg2[%c0_1, %c0_2] : memref<8x256xi8, #tpu.memory_space<vmem>>, vector<8x256xi8>
    %4 = arith.sitofp %3 : vector<8x256xi8> to vector<8x256xf32>
    %5 = vector.broadcast %1 : vector<8x1xf32> to vector<8x256xf32>
    %6 = arith.mulf %4, %5 : vector<8x256xf32>
    %7 = vector.broadcast %2 : vector<8x1xf32> to vector<8x256xf32>
    %8 = arith.addf %6, %7 : vector<8x256xf32>
    %c0_3 = arith.constant 0 : index
    %c0_4 = arith.constant 0 : index
    %9 = vector.load %arg4[%c0_3, %c0_4] : memref<8x256xf32, #tpu.memory_space<vmem>>, vector<8x256xf32>
    tpu.vector_store %arg4[%c0_3, %c0_4], %8 {strides = array<i32>} : memref<8x256xf32, #tpu.memory_space<vmem>>, vector<8x256xf32>,
    return
  }
  func.func @transform_0(%arg0: i32, %arg1: i32) -> (i32, i32) {
    %c0_i32 = arith.constant 0 : i32
    return %arg0, %arg1 : i32, i32
  }
  func.func @transform_1(%arg0: i32, %arg1: i32) -> (i32, i32) {
    %c0_i32 = arith.constant 0 : i32
    %c0_i32_0 = arith.constant 0 : i32
    return %arg0, %c0_i32 : i32, i32
  }
  func.func @transform_2(%arg0: i32, %arg1: i32) -> (i32, i32) {
    %c0_i32 = arith.constant 0 : i32
    return %arg0, %arg1 : i32, i32
  }
}

</mosaic_0001>

<bundles_post_ra>
// kernel: dequantize_along_axis.1
= control target key start
LH: loop header
LB: loop body
LE: loop exit
PB: predicated region body
PF: predicated region fallthrough
CT: control target
= control target key end

     0   :  { %v40_v0 = vmov 0   ;;  %v41_v2 = vmov 1   ;;  %s69_s1 = inlined_call_operand.vmem [shape: f32[8,2], index: 1, kind: input, shape index: {}]   ;;  %s70_s0 = inlined_call_operand.vmem [shape: s8[8,256], index: 0, kind: input, shape index: {}]   ;;  %s71_s2 = inlined_call_operand.vmem [shape: f32[8,256], index: 2, kind: output, shape index: {}]  }
   0x1   :  { %38 = vset.pattern.permute.xlu0 %v40_v0  ;;  %v11_v1 = vld [vmem:[%s69_s1] sm:$0xff] }
   0x2   :  { %19 = vperm.xlu0 %38, %v11_v1   ;;  %v12_v3 = vld [vmem:[%s70_s0] sm:$0xf] }
   0x3   :  { %v13_v4 = vunpack.c.0.s8 %v12_v3  ;;  %v14_v5 = vunpack.c.1.s8 %v12_v3 }
   0x5   :  { %v15_v7 = vcvt.s32.f32 %v13_v4  ;;  %v16_v8 = vcvt.s32.f32 %v14_v5 }
   0x6   :  { %39 = vset.pattern.permute.xlu0 %v41_v2 }
   0x7   :  { %25 = vperm.xlu0 %39, %v11_v1  }
  0x7d   :  { %v20_v6 = vpop.permute.xlu0 %19 }
  0x7e   :  { %v22_v9 = vmul.f32 %v20_v6, %v15_v7  ;;  %v23_v10 = vmul.f32 %v20_v6, %v16_v8 }
  0x82   :  { %v26_v11 = vpop.permute.xlu0 %25 }
  0x83   :  { %v28_v12 = vadd.f32 %v26_v11, %v22_v9  ;;  %v29_v13 = vadd.f32 %v26_v11, %v23_v10 }
  0x85   :  { %30 = vst [vmem:[%s71_s2] sm:$0xff] %v28_v12  ;;  %31 = vst [vmem:[%s71_s2 + $0x8] sm:$0xff] %v29_v13 }

</bundles_post_ra>
